<compile_context>
chip_gen: v7x
topology: tpu7x:2x2x1
jax: 0.10.0
libtpu: 0.0.40
codegen_flags: <defaults>
</compile_context>

<pallas_src>
import jax
import jax.numpy as jnp
from jax.experimental import pallas as pl
from jax.experimental.pallas import tpu as pltpu

# ----------------------------- static shapes --------------------------------
B = 2                       # batch
C_LAT = 4                   # latent channels (noisy_latents)
H = W = 16                  # latent spatial size
N = H * W                   # flattened spatial -> lane axis (2 x 128)
SEQ = 8                     # encoder_hidden_states sequence length
D_HID = 32                  # encoder_hidden_states hidden size
C_FEAT = 32                 # guidance feature / UNet inner channels
C_MID = 32                  # guidance encoder hidden channels
T_DIM = 32                  # sinusoidal time-embedding dim
GUIDANCE_INPUT_CHANNELS = [3, 2]          # e.g. ["flame", "depth"]
C_GUID_TOTAL = sum(GUIDANCE_INPUT_CHANNELS)
C_IN_TOTAL = C_GUID_TOTAL + C_LAT         # [guid_a | guid_b | latents] = 9


# ------------------------------ Pallas kernel --------------------------------
def _champ_kernel(x_ref, ehs_ref, ehst_ref, temb_ref,
                  wf_ref, wsq_ref, wout_ref, bias_ref,
                  pred_ref):
    """Fused guidance encoders + reference UNet, channel-major (C, N) layout."""
    f32 = jnp.float32
    x = x_ref[...]           # (C_IN_TOTAL, N) = [guidance channels ; latents]
    ehs = ehs_ref[...]       # (SEQ, D_HID)
    ehs_t = ehst_ref[...]    # (D_HID, SEQ)
    temb = temb_ref[...]     # (T_DIM, 1)
    w_first = wf_ref[...]    # (3*C_FEAT, C_IN_TOTAL)  block-diagonal
    w_sq = wsq_ref[...]      # (8*C_FEAT, C_FEAT)      packed 32x32 weights
    w_out = wout_ref[...]    # (C_LAT, C_FEAT)
    bias = bias_ref[...]     # (6*C_FEAT + C_LAT, 1)   packed biases

    def mm(a, b):
        return jnp.dot(a, b, preferred_element_type=f32)

    def silu(z):
        return z * jax.nn.sigmoid(z)

    # packed biases (all slices sublane-aligned)
    b_first = bias[0:3 * C_FEAT]                      # guid1a | guid1b | conv_in
    b_guid = bias[3 * C_FEAT:4 * C_FEAT]              # (b2a + b2b)
    b_t1 = bias[4 * C_FEAT:5 * C_FEAT]
    b_t2 = bias[5 * C_FEAT:6 * C_FEAT]
    b_out = bias[6 * C_FEAT:6 * C_FEAT + C_LAT]

    # packed 32x32 weights (rows in multiples of 32 -> sublane-aligned)
    w2a = w_sq[0:C_FEAT]
    w2b = w_sq[C_FEAT:2 * C_FEAT]
    wt1 = w_sq[2 * C_FEAT:3 * C_FEAT]
    wt2 = w_sq[3 * C_FEAT:4 * C_FEAT]
    wq = w_sq[4 * C_FEAT:5 * C_FEAT]
    wk = w_sq[5 * C_FEAT:6 * C_FEAT]
    wv_t = w_sq[6 * C_FEAT:7 * C_FEAT]
    wo = w_sq[7 * C_FEAT:8 * C_FEAT]

    # ---- channel split + guidance layer-1 + UNet conv_in, fused as one
    #      block-diagonal matmul (exactly equivalent to torch.split + convs) ----
    h1 = mm(w_first, x) + b_first                     # (3*C_FEAT, N)
    ha = silu(h1[0:C_FEAT])                           # guidance encoder 0
    hb = silu(h1[C_FEAT:2 * C_FEAT])                  # guidance encoder 1
    h = h1[2 * C_FEAT:3 * C_FEAT]                     # conv_in(noisy_latents)

    # guidance layer-2 per encoder, then stack(...).sum(0) + injection into UNet
    h = h + mm(w2a, ha) + mm(w2b, hb) + b_guid        # (C_FEAT, N)

    # time-embedding MLP, broadcast over the spatial (lane) axis
    t = silu(mm(wt1, temb) + b_t1)                    # (C_FEAT, 1)
    t = mm(wt2, t) + b_t2
    h = h + t

    # cross-attention: queries from spatial features, keys/values from text
    q = mm(wq, h)                                     # (C_FEAT, N)
    k = mm(ehs, wk)                                   # (SEQ, C_FEAT)
    v_t = mm(wv_t, ehs_t)                             # (C_FEAT, SEQ) = (ehs @ Wv)^T
    s = mm(k, q) * (1.0 / (C_FEAT ** 0.5))            # (SEQ, N)
    s = s - jnp.max(s, axis=0, keepdims=True)
    p = jnp.exp(s)
    p = p * pl.reciprocal(jnp.sum(p, axis=0, keepdims=True), approx=True)
    attn = mm(v_t, p)                                 # (C_FEAT, N)
    h = h + mm(wo, attn)

    # conv_out (1x1)
    pred_ref[...] = (mm(w_out, h) + b_out).astype(pred_ref.dtype)


# ------------------------------ param packing --------------------------------
def _pack_params(guid_params, unet_params):
    """Pack the many tiny per-layer weights into 4 slabs consumed by the kernel."""
    (w1a, b1a, w2a, b2a, w1b, b1b, w2b, b2b) = guid_params
    (w_in, b_in, wt1, bt1, wt2, bt2, wq, wk, wv, wo, w_out, b_out) = unet_params
    c0, c1 = GUIDANCE_INPUT_CHANNELS

    def z(r, c):
        return jnp.zeros((r, c), jnp.float32)

    # block-diagonal first layer: [W1a^T 0 0 ; 0 W1b^T 0 ; 0 0 W_in^T]
    w_first = jnp.concatenate([
        jnp.concatenate([w1a.T, z(C_MID, c1), z(C_MID, C_LAT)], axis=1),
        jnp.concatenate([z(C_MID, c0), w1b.T, z(C_MID, C_LAT)], axis=1),
        jnp.concatenate([z(C_FEAT, c0), z(C_FEAT, c1), w_in.T], axis=1),
    ], axis=0)                                                    # (96, 9)

    # packed 32x32 weights, each stored in the orientation its matmul consumes
    w_sq = jnp.concatenate(
        [w2a.T, w2b.T, wt1.T, wt2.T, wq.T, wk, wv.T, wo.T], axis=0)  # (256, 32)

    w_out_c = w_out.T                                             # (C_LAT, C_FEAT)

    bias = jnp.concatenate([
        b1a.T, b1b.T, b_in.T,        # first-layer / conv_in biases   (96, 1)
        (b2a + b2b).T,               # summed guidance layer-2 bias   (32, 1)
        bt1.T, bt2.T,                # time-MLP biases                (64, 1)
        b_out.T,                     # conv_out bias                  ( 4, 1)
    ], axis=0)                                                    # (196, 1)
    return w_first, w_sq, w_out_c, bias


# --------------------------------- wrapper ------------------------------------
def champ_flame_forward(noisy_latents, timesteps, encoder_hidden_states,
                        multi_guidance_cond, guid_params, unet_params):
    """noisy_latents: (B, C_LAT, H, W)   multi_guidance_cond: (B, C_GUID_TOTAL, H, W)
    timesteps: (B,) int32                encoder_hidden_states: (B, SEQ, D_HID)
    Returns model_pred: (B, C_LAT, H, W) (NCHW, matching the PyTorch module)."""
    b_, c_lat, h_, w_ = noisy_latents.shape
    n = h_ * w_

    # NCHW -> (B, C, N): pure reshape (channels on sublanes, spatial on lanes)
    lat = noisy_latents.reshape(b_, c_lat, n).astype(jnp.float32)
    cond = multi_guidance_cond.reshape(b_, C_GUID_TOTAL, n).astype(jnp.float32)
    x9 = jnp.concatenate([cond, lat], axis=1)                     # (B, 9, N)

    ehs = encoder_hidden_states.astype(jnp.float32)               # (B, SEQ, D_HID)
    ehs_t = jnp.transpose(ehs, (0, 2, 1))                         # (B, D_HID, SEQ)

    # sinusoidal time embedding as a column vector per batch element.
    # TODO(synk): sin/cos kept in the XLA wrapper; only the time MLP runs in-kernel.
    half = T_DIM // 2
    freqs = jnp.exp(-jnp.log(10000.0) * jnp.arange(half, dtype=jnp.float32) / half)
    ang = timesteps.astype(jnp.float32)[:, None] * freqs[None, :]
    temb = jnp.concatenate([jnp.sin(ang), jnp.cos(ang)], axis=-1)[:, :, None]  # (B, T_DIM, 1)

    w_first, w_sq, w_out_c, bias = _pack_params(guid_params, unet_params)

    def _w_spec(arr):
        return pl.BlockSpec(arr.shape, lambda b, _nd=arr.ndim: (0,) * _nd)

    pred = pl.pallas_call(
        _champ_kernel,
        out_shape=jax.ShapeDtypeStruct((b_, C_LAT, n), jnp.float32),
        grid=(b_,),
        in_specs=[
            pl.BlockSpec((None, C_IN_TOTAL, n), lambda b: (b, 0, 0)),
            pl.BlockSpec((None, SEQ, D_HID), lambda b: (b, 0, 0)),
            pl.BlockSpec((None, D_HID, SEQ), lambda b: (b, 0, 0)),
            pl.BlockSpec((None, T_DIM, 1), lambda b: (b, 0, 0)),
            _w_spec(w_first), _w_spec(w_sq), _w_spec(w_out_c), _w_spec(bias),
        ],
        out_specs=pl.BlockSpec((None, C_LAT, n), lambda b: (b, 0, 0)),
        compiler_params=pltpu.CompilerParams(dimension_semantics=("parallel",)),
    )(x9, ehs, ehs_t, temb, w_first, w_sq, w_out_c, bias)

    # (B, C, N) -> NCHW is a pure reshape (no transpose needed)
    return pred.reshape(b_, C_LAT, h_, w_)


# --------------------------------- params ------------------------------------
def init_params(key):
    ks = jax.random.split(key, 24)

    def w(k, shape, scale=0.1):
        return (scale * jax.random.normal(k, shape)).astype(jnp.float32)

    def bvec(k, c, scale=0.02):
        return (scale * jax.random.normal(k, (1, c))).astype(jnp.float32)

    c0, c1 = GUIDANCE_INPUT_CHANNELS
    guid_params = (
        w(ks[0], (c0, C_MID)), bvec(ks[1], C_MID),
        w(ks[2], (C_MID, C_FEAT)), bvec(ks[3], C_FEAT),
        w(ks[4], (c1, C_MID)), bvec(ks[5], C_MID),
        w(ks[6], (C_MID, C_FEAT)), bvec(ks[7], C_FEAT),
    )
    unet_params = (
        w(ks[8], (C_LAT, C_FEAT)), bvec(ks[9], C_FEAT),     # conv_in
        w(ks[10], (T_DIM, C_FEAT)), bvec(ks[11], C_FEAT),   # time MLP 1
        w(ks[12], (C_FEAT, C_FEAT)), bvec(ks[13], C_FEAT),  # time MLP 2
        w(ks[14], (C_FEAT, C_FEAT)),                        # Wq
        w(ks[15], (D_HID, C_FEAT)),                         # Wk
        w(ks[16], (D_HID, C_FEAT)),                         # Wv
        w(ks[17], (C_FEAT, C_FEAT)),                        # Wo
        w(ks[18], (C_FEAT, C_LAT)), bvec(ks[19], C_LAT),    # conv_out
    )
    return guid_params, unet_params


if __name__ == "__main__":
    key = jax.random.PRNGKey(0)
    k1, k2, k3, k4 = jax.random.split(key, 4)
    noisy_latents = jax.random.normal(k1, (B, C_LAT, H, W), dtype=jnp.float32)
    timesteps = jax.random.randint(k2, (B,), 0, 1000, dtype=jnp.int32)
    encoder_hidden_states = jax.random.normal(k3, (B, SEQ, D_HID), dtype=jnp.float32)
    multi_guidance_cond = jax.random.normal(k4, (B, C_GUID_TOTAL, H, W), dtype=jnp.float32)

    guid_params, unet_params = init_params(jax.random.PRNGKey(42))

    fwd = jax.jit(champ_flame_forward)
    model_pred = fwd(noisy_latents, timesteps, encoder_hidden_states,
                     multi_guidance_cond, guid_params, unet_params)
    jax.block_until_ready(model_pred)
    assert model_pred.shape == (B, C_LAT, H, W)
    print("KERNEL_OK")
</pallas_src>

<mosaic_0001>
module attributes {stable_mosaic.version = 11 : i64} {
  func.func @_champ_kernel(%arg0: i32, %arg1: memref<1x9x256xf32, #tpu.memory_space<vmem>>, %arg2: memref<1x8x32xf32, #tpu.memory_space<vmem>>, %arg3: memref<1x32x8xf32, #tpu.memory_space<vmem>>, %arg4: memref<1x32x1xf32, #tpu.memory_space<vmem>>, %arg5: memref<96x9xf32, #tpu.memory_space<vmem>>, %arg6: memref<256x32xf32, #tpu.memory_space<vmem>>, %arg7: memref<4x32xf32, #tpu.memory_space<vmem>>, %arg8: memref<196x1xf32, #tpu.memory_space<vmem>>, %arg9: memref<1x4x256xf32, #tpu.memory_space<vmem>>) attributes {dimension_semantics = [#tpu.dimension_semantics<parallel>], iteration_bounds = array<i64: 2>, scalar_prefetch = 0 : i64, scratch_operands = 0 : i64, tpu.core_type = #tpu.core_type<tc>, window_params = [{transform_indices = @transform_0, window_bounds = array<i64: 1, 9, 256>}, {transform_indices = @transform_1, window_bounds = array<i64: 1, 8, 32>}, {transform_indices = @transform_2, window_bounds = array<i64: 1, 32, 8>}, {transform_indices = @transform_3, window_bounds = array<i64: 1, 32, 1>}, {pipeline_mode = #tpu.pipeline_mode<synchronous>, transform_indices = @transform_4, window_bounds = array<i64: 96, 9>}, {pipeline_mode = #tpu.pipeline_mode<synchronous>, transform_indices = @transform_5, window_bounds = array<i64: 256, 32>}, {pipeline_mode = #tpu.pipeline_mode<synchronous>, transform_indices = @transform_6, window_bounds = array<i64: 4, 32>}, {pipeline_mode = #tpu.pipeline_mode<synchronous>, transform_indices = @transform_7, window_bounds = array<i64: 196, 1>}, {transform_indices = @transform_8, window_bounds = array<i64: 1, 4, 256>}]} {
    %c0 = arith.constant 0 : index
    %c0_0 = arith.constant 0 : index
    %c0_1 = arith.constant 0 : index
    %0 = vector.load %arg1[%c0, %c0_0, %c0_1] : memref<1x9x256xf32, #tpu.memory_space<vmem>>, vector<1x9x256xf32>
    %1 = vector.shape_cast %0 : vector<1x9x256xf32> to vector<9x256xf32>
    %c0_2 = arith.constant 0 : index
    %c0_3 = arith.constant 0 : index
    %c0_4 = arith.constant 0 : index
    %2 = vector.load %arg2[%c0_2, %c0_3, %c0_4] : memref<1x8x32xf32, #tpu.memory_space<vmem>>, vector<1x8x32xf32>
    %3 = vector.shape_cast %2 : vector<1x8x32xf32> to vector<8x32xf32>
    %c0_5 = arith.constant 0 : index
    %c0_6 = arith.constant 0 : index
    %c0_7 = arith.constant 0 : index
    %4 = vector.load %arg3[%c0_5, %c0_6, %c0_7] : memref<1x32x8xf32, #tpu.memory_space<vmem>>, vector<1x32x8xf32>
    %5 = vector.shape_cast %4 : vector<1x32x8xf32> to vector<32x8xf32>
    %c0_8 = arith.constant 0 : index
    %c0_9 = arith.constant 0 : index
    %c0_10 = arith.constant 0 : index
    %6 = vector.load %arg4[%c0_8, %c0_9, %c0_10] : memref<1x32x1xf32, #tpu.memory_space<vmem>>, vector<1x32x1xf32>
    %7 = vector.shape_cast %6 : vector<1x32x1xf32> to vector<32x1xf32>
    %c0_11 = arith.constant 0 : index
    %c0_12 = arith.constant 0 : index
    %8 = vector.load %arg5[%c0_11, %c0_12] : memref<96x9xf32, #tpu.memory_space<vmem>>, vector<96x9xf32>
    %c0_13 = arith.constant 0 : index
    %c0_14 = arith.constant 0 : index
    %9 = vector.load %arg6[%c0_13, %c0_14] : memref<256x32xf32, #tpu.memory_space<vmem>>, vector<256x32xf32>
    %c0_15 = arith.constant 0 : index
    %c0_16 = arith.constant 0 : index
    %10 = vector.load %arg7[%c0_15, %c0_16] : memref<4x32xf32, #tpu.memory_space<vmem>>, vector<4x32xf32>
    %c0_17 = arith.constant 0 : index
    %c0_18 = arith.constant 0 : index
    %11 = vector.load %arg8[%c0_17, %c0_18] : memref<196x1xf32, #tpu.memory_space<vmem>>, vector<196x1xf32>
    %12 = vector.extract_strided_slice %11 {offsets = [0, 0], sizes = [96, 1], strides = [1, 1]} : vector<196x1xf32> to vector<96x1xf32>
    %13 = vector.extract_strided_slice %11 {offsets = [96, 0], sizes = [32, 1], strides = [1, 1]} : vector<196x1xf32> to vector<32x1xf32>
    %14 = vector.extract_strided_slice %11 {offsets = [128, 0], sizes = [32, 1], strides = [1, 1]} : vector<196x1xf32> to vector<32x1xf32>
    %15 = vector.extract_strided_slice %11 {offsets = [160, 0], sizes = [32, 1], strides = [1, 1]} : vector<196x1xf32> to vector<32x1xf32>
    %16 = vector.extract_strided_slice %11 {offsets = [192, 0], sizes = [4, 1], strides = [1, 1]} : vector<196x1xf32> to vector<4x1xf32>
    %17 = vector.extract_strided_slice %9 {offsets = [0, 0], sizes = [32, 32], strides = [1, 1]} : vector<256x32xf32> to vector<32x32xf32>
    %18 = vector.extract_strided_slice %9 {offsets = [32, 0], sizes = [32, 32], strides = [1, 1]} : vector<256x32xf32> to vector<32x32xf32>
    %19 = vector.extract_strided_slice %9 {offsets = [64, 0], sizes = [32, 32], strides = [1, 1]} : vector<256x32xf32> to vector<32x32xf32>
    %20 = vector.extract_strided_slice %9 {offsets = [96, 0], sizes = [32, 32], strides = [1, 1]} : vector<256x32xf32> to vector<32x32xf32>
    %21 = vector.extract_strided_slice %9 {offsets = [128, 0], sizes = [32, 32], strides = [1, 1]} : vector<256x32xf32> to vector<32x32xf32>
    %22 = vector.extract_strided_slice %9 {offsets = [160, 0], sizes = [32, 32], strides = [1, 1]} : vector<256x32xf32> to vector<32x32xf32>
    %23 = vector.extract_strided_slice %9 {offsets = [192, 0], sizes = [32, 32], strides = [1, 1]} : vector<256x32xf32> to vector<32x32xf32>
    %24 = vector.extract_strided_slice %9 {offsets = [224, 0], sizes = [32, 32], strides = [1, 1]} : vector<256x32xf32> to vector<32x32xf32>
    %cst = arith.constant dense<0.000000e+00> : vector<96x256xf32>
    %25 = tpu.matmul %8, %1, %cst {dimension_numbers = #tpu.dot_dimension_numbers<[1], [0], [0], [1], [0, 0, 1, 1], [], []>} : vector<96x9xf32>, vector<9x256xf32>, vector<96x256xf32> -> vector<96x256xf32>
    %26 = vector.broadcast %12 : vector<96x1xf32> to vector<96x256xf32>
    %27 = arith.addf %25, %26 : vector<96x256xf32>
    %28 = vector.extract_strided_slice %27 {offsets = [0, 0], sizes = [32, 256], strides = [1, 1]} : vector<96x256xf32> to vector<32x256xf32>
    %29 = arith.negf %28 : vector<32x256xf32>
    %30 = math.exp %29 : vector<32x256xf32>
    %cst_19 = arith.constant 1.000000e+00 : f32
    %31 = vector.broadcast %cst_19 : f32 to vector<32x256xf32>
    %32 = arith.addf %31, %30 : vector<32x256xf32>
    %33 = arith.divf %31, %32 : vector<32x256xf32>
    %34 = arith.mulf %28, %33 : vector<32x256xf32>
    %35 = vector.extract_strided_slice %27 {offsets = [32, 0], sizes = [32, 256], strides = [1, 1]} : vector<96x256xf32> to vector<32x256xf32>
    %36 = arith.negf %35 : vector<32x256xf32>
    %37 = math.exp %36 : vector<32x256xf32>
    %cst_20 = arith.constant 1.000000e+00 : f32
    %38 = vector.broadcast %cst_20 : f32 to vector<32x256xf32>
    %39 = arith.addf %38, %37 : vector<32x256xf32>
    %40 = arith.divf %38, %39 : vector<32x256xf32>
    %41 = arith.mulf %35, %40 : vector<32x256xf32>
    %42 = vector.extract_strided_slice %27 {offsets = [64, 0], sizes = [32, 256], strides = [1, 1]} : vector<96x256xf32> to vector<32x256xf32>
    %cst_21 = arith.constant dense<0.000000e+00> : vector<32x256xf32>
    %43 = tpu.matmul %17, %34, %cst_21 {dimension_numbers = #tpu.dot_dimension_numbers<[1], [0], [0], [1], [0, 0, 1, 1], [], []>} : vector<32x32xf32>, vector<32x256xf32>, vector<32x256xf32> -> vector<32x256xf32>
    %44 = arith.addf %42, %43 : vector<32x256xf32>
    %cst_22 = arith.constant dense<0.000000e+00> : vector<32x256xf32>
    %45 = tpu.matmul %18, %41, %cst_22 {dimension_numbers = #tpu.dot_dimension_numbers<[1], [0], [0], [1], [0, 0, 1, 1], [], []>} : vector<32x32xf32>, vector<32x256xf32>, vector<32x256xf32> -> vector<32x256xf32>
    %46 = arith.addf %44, %45 : vector<32x256xf32>
    %47 = vector.broadcast %13 : vector<32x1xf32> to vector<32x256xf32>
    %48 = arith.addf %46, %47 : vector<32x256xf32>
    %cst_23 = arith.constant dense<0.000000e+00> : vector<32x1xf32>
    %49 = tpu.matmul %19, %7, %cst_23 {dimension_numbers = #tpu.dot_dimension_numbers<[1], [0], [0], [1], [0, 0, 1, 1], [], []>} : vector<32x32xf32>, vector<32x1xf32>, vector<32x1xf32> -> vector<32x1xf32>
    %50 = arith.addf %49, %14 : vector<32x1xf32>
    %51 = arith.negf %50 : vector<32x1xf32>
    %52 = math.exp %51 : vector<32x1xf32>
    %cst_24 = arith.constant 1.000000e+00 : f32
    %53 = vector.broadcast %cst_24 : f32 to vector<32x1xf32>
    %54 = arith.addf %53, %52 : vector<32x1xf32>
    %55 = arith.divf %53, %54 : vector<32x1xf32>
    %56 = arith.mulf %50, %55 : vector<32x1xf32>
    %cst_25 = arith.constant dense<0.000000e+00> : vector<32x1xf32>
    %57 = tpu.matmul %20, %56, %cst_25 {dimension_numbers = #tpu.dot_dimension_numbers<[1], [0], [0], [1], [0, 0, 1, 1], [], []>} : vector<32x32xf32>, vector<32x1xf32>, vector<32x1xf32> -> vector<32x1xf32>
    %58 = arith.addf %57, %15 : vector<32x1xf32>
    %59 = vector.broadcast %58 : vector<32x1xf32> to vector<32x256xf32>
    %60 = arith.addf %48, %59 : vector<32x256xf32>
    %cst_26 = arith.constant dense<0.000000e+00> : vector<32x256xf32>
    %61 = tpu.matmul %21, %60, %cst_26 {dimension_numbers = #tpu.dot_dimension_numbers<[1], [0], [0], [1], [0, 0, 1, 1], [], []>} : vector<32x32xf32>, vector<32x256xf32>, vector<32x256xf32> -> vector<32x256xf32>
    %cst_27 = arith.constant dense<0.000000e+00> : vector<8x32xf32>
    %62 = tpu.matmul %3, %22, %cst_27 {dimension_numbers = #tpu.dot_dimension_numbers<[1], [0], [0], [1], [0, 0, 1, 1], [], []>} : vector<8x32xf32>, vector<32x32xf32>, vector<8x32xf32> -> vector<8x32xf32>
    %cst_28 = arith.constant dense<0.000000e+00> : vector<32x8xf32>
    %63 = tpu.matmul %23, %5, %cst_28 {dimension_numbers = #tpu.dot_dimension_numbers<[1], [0], [0], [1], [0, 0, 1, 1], [], []>} : vector<32x32xf32>, vector<32x8xf32>, vector<32x8xf32> -> vector<32x8xf32>
    %cst_29 = arith.constant dense<0.000000e+00> : vector<8x256xf32>
    %64 = tpu.matmul %62, %61, %cst_29 {dimension_numbers = #tpu.dot_dimension_numbers<[1], [0], [0], [1], [0, 0, 1, 1], [], []>} : vector<8x32xf32>, vector<32x256xf32>, vector<8x256xf32> -> vector<8x256xf32>
    %cst_30 = arith.constant 0.176776692 : f32
    %65 = vector.broadcast %cst_30 : f32 to vector<8x256xf32>
    %66 = arith.mulf %64, %65 : vector<8x256xf32>
    %cst_31 = arith.constant dense<0xFF800000> : vector<256xf32>
    %67 = vector.multi_reduction <maximumf>, %66, %cst_31 [0] : vector<8x256xf32> to vector<256xf32>
    %68 = vector.shape_cast %67 : vector<256xf32> to vector<1x256xf32>
    %69 = vector.broadcast %68 : vector<1x256xf32> to vector<8x256xf32>
    %70 = arith.subf %66, %69 : vector<8x256xf32>
    %71 = math.exp %70 : vector<8x256xf32>
    %cst_32 = arith.constant dense<0.000000e+00> : vector<256xf32>
    %72 = vector.multi_reduction <add>, %71, %cst_32 [0] : vector<8x256xf32> to vector<256xf32>
    %73 = vector.shape_cast %72 : vector<256xf32> to vector<1x256xf32>
    %74 = tpu.reciprocal %73 {approx = true} : vector<1x256xf32> -> vector<1x256xf32>
    %75 = vector.broadcast %74 : vector<1x256xf32> to vector<8x256xf32>
    %76 = arith.mulf %71, %75 : vector<8x256xf32>
    %cst_33 = arith.constant dense<0.000000e+00> : vector<32x256xf32>
    %77 = tpu.matmul %63, %76, %cst_33 {dimension_numbers = #tpu.dot_dimension_numbers<[1], [0], [0], [1], [0, 0, 1, 1], [], []>} : vector<32x8xf32>, vector<8x256xf32>, vector<32x256xf32> -> vector<32x256xf32>
    %cst_34 = arith.constant dense<0.000000e+00> : vector<32x256xf32>
    %78 = tpu.matmul %24, %77, %cst_34 {dimension_numbers = #tpu.dot_dimension_numbers<[1], [0], [0], [1], [0, 0, 1, 1], [], []>} : vector<32x32xf32>, vector<32x256xf32>, vector<32x256xf32> -> vector<32x256xf32>
    %79 = arith.addf %60, %78 : vector<32x256xf32>
    %cst_35 = arith.constant dense<0.000000e+00> : vector<4x256xf32>
    %80 = tpu.matmul %10, %79, %cst_35 {dimension_numbers = #tpu.dot_dimension_numbers<[1], [0], [0], [1], [0, 0, 1, 1], [], []>} : vector<4x32xf32>, vector<32x256xf32>, vector<4x256xf32> -> vector<4x256xf32>
    %81 = vector.broadcast %16 : vector<4x1xf32> to vector<4x256xf32>
    %82 = arith.addf %80, %81 : vector<4x256xf32>
    %c0_36 = arith.constant 0 : index
    %c0_37 = arith.constant 0 : index
    %c0_38 = arith.constant 0 : index
    %83 = vector.load %arg9[%c0_36, %c0_37, %c0_38] : memref<1x4x256xf32, #tpu.memory_space<vmem>>, vector<1x4x256xf32>
    %84 = vector.shape_cast %83 : vector<1x4x256xf32> to vector<4x256xf32>
    %85 = vector.shape_cast %82 : vector<4x256xf32> to vector<1x4x256xf32>
    tpu.vector_store %arg9[%c0_36, %c0_37, %c0_38], %85 {strides = array<i32>} : memref<1x4x256xf32, #tpu.memory_space<vmem>>, vector<1x4x256xf32>,
    return
  }
  func.func @transform_0(%arg0: i32) -> (i32, i32, i32) {
    %c0_i32 = arith.constant 0 : i32
    %c0_i32_0 = arith.constant 0 : i32
    %c0_i32_1 = arith.constant 0 : i32
    return %arg0, %c0_i32, %c0_i32_0 : i32, i32, i32
  }
  func.func @transform_1(%arg0: i32) -> (i32, i32, i32) {
    %c0_i32 = arith.constant 0 : i32
    %c0_i32_0 = arith.constant 0 : i32
    %c0_i32_1 = arith.constant 0 : i32
    return %arg0, %c0_i32, %c0_i32_0 : i32, i32, i32
  }
  func.func @transform_2(%arg0: i32) -> (i32, i32, i32) {
    %c0_i32 = arith.constant 0 : i32
    %c0_i32_0 = arith.constant 0 : i32
    %c0_i32_1 = arith.constant 0 : i32
    return %arg0, %c0_i32, %c0_i32_0 : i32, i32, i32
  }
  func.func @transform_3(%arg0: i32) -> (i32, i32, i32) {
    %c0_i32 = arith.constant 0 : i32
    %c0_i32_0 = arith.constant 0 : i32
    %c0_i32_1 = arith.constant 0 : i32
    return %arg0, %c0_i32, %c0_i32_0 : i32, i32, i32
  }
  func.func @transform_4(%arg0: i32) -> (i32, i32) {
    %c0_i32 = arith.constant 0 : i32
    %c0_i32_0 = arith.constant 0 : i32
    %c0_i32_1 = arith.constant 0 : i32
    return %c0_i32, %c0_i32_0 : i32, i32
  }
  func.func @transform_5(%arg0: i32) -> (i32, i32) {
    %c0_i32 = arith.constant 0 : i32
    %c0_i32_0 = arith.constant 0 : i32
    %c0_i32_1 = arith.constant 0 : i32
    return %c0_i32, %c0_i32_0 : i32, i32
  }
  func.func @transform_6(%arg0: i32) -> (i32, i32) {
    %c0_i32 = arith.constant 0 : i32
    %c0_i32_0 = arith.constant 0 : i32
    %c0_i32_1 = arith.constant 0 : i32
    return %c0_i32, %c0_i32_0 : i32, i32
  }
  func.func @transform_7(%arg0: i32) -> (i32, i32) {
    %c0_i32 = arith.constant 0 : i32
    %c0_i32_0 = arith.constant 0 : i32
    %c0_i32_1 = arith.constant 0 : i32
    return %c0_i32, %c0_i32_0 : i32, i32
  }
  func.func @transform_8(%arg0: i32) -> (i32, i32, i32) {
    %c0_i32 = arith.constant 0 : i32
    %c0_i32_0 = arith.constant 0 : i32
    %c0_i32_1 = arith.constant 0 : i32
    return %arg0, %c0_i32, %c0_i32_0 : i32, i32, i32
  }
}

</mosaic_0001>

<bundles_post_ra>
// kernel: champ_flame_forward.1
= control target key start
LH: loop header
LB: loop body
LE: loop exit
PB: predicated region body
PF: predicated region fallthrough
CT: control target
= control target key end

     0   :  { %s2503_s27 = smov 0   ;;  %s2950_s0 = inlined_call_operand.vmem [shape: f32[2,9,256], index: 0, kind: input, shape index: {}]   ;;  %s2951_s1 = inlined_call_operand.vmem [shape: f32[2,8,32], index: 1, kind: input, shape index: {}]   ;;  %s2952_s2 = inlined_call_operand.vmem [shape: f32[2,32,8], index: 2, kind: input, shape index: {}]   ;;  %s2953_s3 = inlined_call_operand.vmem [shape: f32[2,32,1], index: 3, kind: input, shape index: {}]   ;;  %s2954_s4 = inlined_call_operand.vmem [shape: f32[96,9], index: 4, kind: input, shape index: {}]   ;;  %s2955_s5 = inlined_call_operand.vmem [shape: f32[256,32], index: 5, kind: input, shape index: {}]   ;;  %s2956_s6 = inlined_call_operand.vmem [shape: f32[4,32], index: 6, kind: input, shape index: {}]   ;;  %s2957_s7 = inlined_call_operand.vmem [shape: f32[196,1], index: 7, kind: input, shape index: {}]   ;;  %s2958_s8 = inlined_call_operand.vmem [shape: f32[2,4,256], index: 8, kind: output, shape index: {}]  }
   0x1 LB: > { %s2063_s28 = sadd.s32 4294967295, %s2451_s27   ;;  %p2067_p0 = scmp.ge.s32.totalorder %s2451_s27, 1  ;;  %s2451_s27 = sphi %s2503_s27, %s18_s27  }
   0x2   : > { %p291_p1 = scmp.lt.s32.totalorder %s2451_s27, 3 }
   0x4   : > { %p292_p2 = pnand %p2067_p0, %p291_p1 }
   0x5   : > { %p339_p3 = scmp.lt.s32.totalorder (!%p292_p2), %s2063_s28, 1  ;;  %v2453_v0 = vmov (!%p292_p2), 0.0   ;;  %v396_v1 = vld [vmem:[%s2955_s5 + $0x40] sm:$0xff] (!%p292_p2)  ;;  %vm799_vm0 = vcmask (!%p292_p2), 261120   ;;  %vm543_vm1 = vcmask (!%p292_p2), 1040384   ;;  %v2454_v2 = vmov (!%p292_p2), 0  }
   0x6   : > { %295 = sbr.rel (%p292_p2) target bundleno = 1818 (0x71a), region = 52  ;;  %614 = vmatprep.mubr.f32.mxu0 (!%p292_p2), %v2453_v0  ;;  %2189 = vmatprep.mubr.msk.f32.mxu1 (!%p292_p2), %vm799_vm0, %v396_v1  ;;  %vm2455_vm2 = vmmov (!%p292_p2), 1   ;;  %v421_v4 = vld [vmem:[%s2957_s7] sm:$0xff] (!%p292_p2)  ;;  %v423_v5 = vld [vmem:[%s2957_s7 + $0x10] sm:$0xff] (!%p292_p2)  ;;  %v422_v17 = vld [vmem:[%s2957_s7 + $0x8] sm:$0xff] (!%p292_p2)  ;;  %vm506_vm4 = vcmask (!%p292_p2), 72704  }
   0x7   : > { %2355 = vset.pattern.permute.xlu0 (!%p292_p2), %v2454_v2  ;;  %2356 = vset.pattern.permute.xlu1 (!%p292_p2), %v2454_v2  ;;  %vm2525_vm3 = vmpackc.low (!%p292_p2), %vm543_vm1, %vm2455_vm2  ;;  %v424_v19 = vld [vmem:[%s2957_s7 + $0x18] sm:$0xff] (!%p292_p2)  ;;  %v376_v20 = vld [vmem:[%s2954_s4] sm:$0xff] (!%p292_p2)  ;;  %vm2457_vm5 = vmmov (!%p292_p2), 0   ;;  %vm1677_vm6 = vcmask (!%p292_p2), 64512  }
   0x8   : > { %448 = vperm.xlu0 (!%p292_p2), %2355, %v421_v4   ;;  %458 = vperm.xlu1 (!%p292_p2), %2356, %v423_v5   ;;  %v425_v21 = vld [vmem:[%s2957_s7 + $0x20] sm:$0xff] (!%p292_p2)  ;;  %v426_v22 = vld [vmem:[%s2957_s7 + $0x28] sm:$0xff] (!%p292_p2)  ;;  %v398_v25 = vld [vmem:[%s2955_s5 + $0x50] sm:$0xff] (!%p292_p2) }
   0x9   : > { %v377_v23 = vld [vmem:[%s2954_s4 + $0x8] sm:$0xff] (!%p292_p2)  ;;  %v427_v26 = vld [vmem:[%s2957_s7 + $0x30] sm:$0xff] (!%p292_p2)  ;;  %v428_v27 = vld [vmem:[%s2957_s7 + $0x38] sm:$0xff] (!%p292_p2) }
   0xa   : > { %v397_v24 = vld [vmem:[%s2955_s5 + $0x48] sm:$0xff] (!%p292_p2)  ;;  %v378_v28 = vld [vmem:[%s2954_s4 + $0x10] sm:$0xff] (!%p292_p2)  ;;  %v399_v29 = vld [vmem:[%s2955_s5 + $0x58] sm:$0xff] (!%p292_p2) }
   0xb   : > { %v429_v30 = vld [vmem:[%s2957_s7 + $0x40] sm:$0xff] (!%p292_p2)  ;;  %v430_v31 = vld [vmem:[%s2957_s7 + $0x48] sm:$0xff] (!%p292_p2)  ;;  %v379_v32 = vld [vmem:[%s2954_s4 + $0x18] sm:$0xff] (!%p292_p2) }
   0xc   : > { %453 = vperm.xlu0 (!%p292_p2), %2355, %v422_v17   ;;  %463 = vperm.xlu1 (!%p292_p2), %2356, %v424_v19   ;;  %v433_v33 = vld [vmem:[%s2957_s7 + $0x60] sm:$0xff] (!%p292_p2)  ;;  %v434_v34 = vld [vmem:[%s2957_s7 + $0x68] sm:$0xff] (!%p292_p2)  ;;  %v431_v36 = vld [vmem:[%s2957_s7 + $0x50] sm:$0xff] (!%p292_p2) }
   0xd   : > { %s2962_s28 = smov (!%p339_p3, %s2063_s28), 1  ;;  %v380_v35 = vld [vmem:[%s2954_s4 + $0x20] sm:$0xff]  ;;  %v432_v37 = vld [vmem:[%s2957_s7 + $0x58] sm:$0xff]  ;;  %v381_v38 = vld [vmem:[%s2954_s4 + $0x28] sm:$0xff] }
   0xe   : > { %s2519_s9 = sshll.u32 %s2962_s28, 5  ;;  %v435_v39 = vld [vmem:[%s2957_s7 + $0x70] sm:$0xff]  ;;  %v436_v40 = vld [vmem:[%s2957_s7 + $0x78] sm:$0xff]  ;;  %v384_v43 = vld [vmem:[%s2954_s4 + $0x40] sm:$0xff]  ;;  %s2070_s20 = sshll.u32 %s2962_s28, 3 }
   0xf   : > { %s343_s12 = scalar_lea.vmem %s2950_s0, %s2519_s9  ;;  %s357_s15 = scalar_lea.vmem %s2953_s3, %s2519_s9  ;;  %v382_v41 = vld [vmem:[%s2954_s4 + $0x30] sm:$0xff]  ;;  %v383_v42 = vld [vmem:[%s2954_s4 + $0x38] sm:$0xff]  ;;  %v385_v44 = vld [vmem:[%s2954_s4 + $0x48] sm:$0xff] }
  0x10   : > { %v364_v6 = vld [vmem:[%s343_s12 + $0x8] sm:$0xff]  ;;  %v366_v7 = vld [vmem:[%s343_s12 + $0x18] sm:$0x1]  ;;  %v372_v8 = vld [vmem:[%s357_s15] sm:$0xff]  ;;  %468 = vperm.xlu0 %2355, %v425_v21   ;;  %473 = vperm.xlu1 %2356, %v426_v22   ;;  %s347_s25 = scalar_lea.vmem %s2951_s1, %s2070_s20  ;;  %s352_s30 = scalar_lea.vmem %s2952_s2, %s2519_s9 }
  0x11   : > { %v2234_v9 = vpack.c.bf16 %v366_v7, %v364_v6  ;;  %v373_v10 = vld [vmem:[%s357_s15 + $0x8] sm:$0xff]  ;;  %v363_v11 = vld [vmem:[%s343_s12] sm:$0xff]  ;;  %v365_v12 = vld [vmem:[%s343_s12 + $0x10] sm:$0x1]  ;;  %s362_s11 = scalar_lea.vmem %s2958_s8, %s2070_s20 }
  0x12   : > { %v2256_v13 = vpack.c.bf16 %v373_v10, %v372_v8  ;;  %v2237_v14 = vpack.c.bf16 %v365_v12, %v363_v11  ;;  %v374_v15 = vld [vmem:[%s357_s15 + $0x10] sm:$0xff]  ;;  %v375_v16 = vld [vmem:[%s357_s15 + $0x18] sm:$0xff]  ;;  %v400_v46 = vld [vmem:[%s2955_s5 + $0x60] sm:$0xff] }
  0x13   : > { %2236 = vmatprep.subr.msk.bf16.mxu0 %vm2525_vm3, %v2234_v9  ;;  %v2260_v18 = vpack.c.bf16 %v375_v16, %v374_v15  ;;  %v386_v45 = vld [vmem:[%s2954_s4 + $0x50] sm:$0xff]  ;;  %v387_v47 = vld [vmem:[%s2954_s4 + $0x58] sm:$0xff]  ;;  %v438_v54 = vld [vmem:[%s2957_s7 + $0x88] sm:$0xff] }
  0x14   : > { %2257 = vmatprep.subr.bf16.mxu1 %v2256_v13  ;;  %2239 = vmatpush1.bf16.msk.msra.mxu0 %vm2525_vm3, %v2237_v14  ;;  %v437_v56 = vld [vmem:[%s2957_s7 + $0x80] sm:$0xff]  ;;  %v440_v4 = vld [vmem:[%s2957_s7 + $0x98] sm:$0xff]  ;;  %v439_v8 = vld [vmem:[%s2957_s7 + $0x90] sm:$0xff] }
  0x15   : > { %2259 = vmatpush3.bf16.msra.mxu1 %v2256_v13  ;;  %478 = vperm.xlu0 %2355, %v427_v26  }
  0x16   : > { %2261 = vmatprep.subr.bf16.mxu1 %v2260_v18  ;;  %483 = vperm.xlu1 %2356, %v428_v27  }
  0x17   : > { %2079 = vmatmul.mubr.msk.f32.vlgmr.msra.gmra.mrb[0].mxu0 %vm506_vm4, %v376_v20 }
  0x18   : > { %620 = vmatprep.mubr.f32.mxu0 %v2453_v0 }
  0x19   : > { %2263 = vmatpush3.bf16.msra.mxu1 %v2260_v18  ;;  %488 = vperm.xlu0 %2355, %v429_v30  }
  0x1a   : > { %493 = vperm.xlu1 %2356, %v430_v31  }
  0x1b   : > { %2080 = vmatmul.mubr.msk.f32.gmra.mrb[2].mxu0 %vm506_vm4, %v377_v23 }
  0x1c   : > { %2190 = vmatmul.mubr.msk.f32.vlgmr.msra.gmra.mrb[0].mxu1 %vm799_vm0, %v397_v24  ;;  %626 = vmatprep.mubr.f32.mxu0 %v2453_v0 }
  0x1d   : > { %2192 = vmatprep.mubr.msk.f32.mxu1 %vm799_vm0, %v398_v25  ;;  %1020 = vperm.xlu0 %2355, %v433_v33  }
  0x1e   : > { %1025 = vperm.xlu1 %2356, %v434_v34  }
  0x1f   : > { %2081 = vmatmul.mubr.msk.f32.gmra.mrb[4].mxu0 %vm506_vm4, %v378_v28 }
  0x20   : > { %2193 = vmatmul.mubr.msk.f32.gmra.mrb[2].mxu1 %vm799_vm0, %v399_v29  ;;  %632 = vmatprep.mubr.f32.mxu0 %v2453_v0 }
  0x21   : > { %498 = vperm.xlu0 %2355, %v431_v36   ;;  %2203 = vmatprep.mubr.msk.f32.mxu1 %vm799_vm0, %v400_v46 }
  0x22   : > { %503 = vperm.xlu1 %2356, %v432_v37  }
  0x23   : > { %2082 = vmatmul.mubr.msk.f32.gmra.mrb[6].mxu0 %vm506_vm4, %v379_v32 }
  0x24   : > { %638 = vmatprep.mubr.f32.mxu0 %v2453_v0 }
  0x25   : > { %1030 = vperm.xlu0 %2355, %v435_v39  }
  0x26   : > { %1035 = vperm.xlu1 %2356, %v436_v40  }
  0x27   : > { %2083 = vmatmul.mubr.msk.f32.gmra.mrb[8].mxu0 %vm506_vm4, %v380_v35 }
  0x28   : > { %644 = vmatprep.mubr.f32.mxu0 %v2453_v0 }
  0x2b   : > { %2084 = vmatmul.mubr.msk.f32.gmra.mrb[10].mxu0 %vm506_vm4, %v381_v38 }
  0x2c   : > { %650 = vmatprep.mubr.f32.mxu0 %v2453_v0 }
  0x2f   : > { %2085 = vmatmul.mubr.msk.f32.gmra.mrb[12].mxu0 %vm506_vm4, %v382_v41 }
  0x30   : > { %656 = vmatprep.mubr.f32.mxu0 %v2453_v0 }
  0x33   : > { %2086 = vmatmul.mubr.msk.f32.gmra.mrb[14].mxu0 %vm506_vm4, %v383_v42 }
  0x34   : > { %662 = vmatprep.mubr.f32.mxu0 %v2453_v0 }
  0x37   : > { %2087 = vmatmul.mubr.msk.f32.gmra.mrb[16].mxu0 %vm506_vm4, %v384_v43 }
  0x38   : > { %668 = vmatprep.mubr.f32.mxu0 %v2453_v0 }
  0x3b   : > { %2088 = vmatmul.mubr.msk.f32.gmra.mrb[18].mxu0 %vm506_vm4, %v385_v44 }
  0x3c   : > { %674 = vmatprep.mubr.f32.mxu0 %v2453_v0 }
  0x3f   : > { %2089 = vmatmul.mubr.msk.f32.gmra.mrb[20].mxu0 %vm506_vm4, %v386_v45 }
  0x40   : > { %680 = vmatprep.mubr.f32.mxu0 %v2453_v0 }
  0x43   : > { %2090 = vmatmul.mubr.msk.f32.gmra.mrb[22].mxu0 %vm506_vm4, %v387_v47 }
  0x44   : > { %876 = vmatprep.mubr.f32.mxu0 %v2453_v0 }
  0x87   : > { %v449_v48 = vpop.permute.xlu0 %448  ;;  %v459_v59 = vpop.permute.xlu1 %458 }
  0x8b   : > { %v454_v53 = vpop.permute.xlu0 %453  ;;  %v464_v17 = vpop.permute.xlu1 %463 }
  0x8f   : > { %v469_v27 = vpop.permute.xlu0 %468  ;;  %v474_v42 = vpop.permute.xlu1 %473 }
  0xea   : > { %v616_v49 = vpop.f32.mrb[0].mxu0 }
  0xeb   : > { %v2661_v50 = vadd.f32 %v616_v49, %v449_v48  ;;  %v618_v51 = vpop.f32.mrb[1].mxu0 }
  0xec   : > { %v2663_v52 = vadd.f32 %v618_v51, %v449_v48 }
  0xed   : > { %v2091_v55 = vmul.f32 -1.442695, %v2661_v50 }
  0xee   : > { %v2092_v57 = vmul.f32 -1.442695, %v2663_v52  ;;  %v622_v58 = vpop.f32.mrb[2].mxu0 }
  0xef   : > { %v2191_v60 = vpop.f32.mrb[0].mxu1  ;;  %2357 = vpow2.f32 %v2091_v55  ;;  %v2673_v61 = vadd.f32 %v622_v58, %v454_v53  ;;  %v624_v62 = vpop.f32.mrb[3].mxu0 }
  0xf0   : > { %v2675_v63 = vadd.f32 %v2191_v60, %v438_v54  ;;  %v1124_v1 = vpop.f32.mrb[1].mxu1  ;;  %2359 = vpow2.f32 %v2092_v57  ;;  %v2677_v2 = vadd.f32 %v624_v62, %v454_v53 }
  0xf1   : > { %v2679_v3 = vadd.f32 %v1124_v1, %v437_v56  ;;  %v2093_v5 = vmul.f32 -1.442695, %v2673_v61 }
  0xf2   : > { %v2120_v6 = vmul.f32 -1.442695, %v2675_v63  ;;  %v2094_v7 = vmul.f32 -1.442695, %v2677_v2  ;;  %v628_v9 = vpop.f32.mrb[4].mxu0 }
  0xf3   : > { %v2119_v10 = vmul.f32 -1.442695, %v2679_v3  ;;  %v2194_v11 = vpop.f32.mrb[2].mxu1  ;;  %2361 = vpow2.f32 %v2093_v5  ;;  %v2691_v12 = vadd.f32 %v628_v9, %v459_v59  ;;  %v630_v13 = vpop.f32.mrb[5].mxu0 }
  0xf4   : > { %2363 = vpow2.f32 %v2120_v6  ;;  %v2693_v14 = vadd.f32 %v2194_v11, %v440_v4  ;;  %v1134_v15 = vpop.f32.mrb[3].mxu1  ;;  %v2695_v16 = vadd.f32 %v630_v13, %v459_v59  ;;  %v484_v4 = vpop.permute.xlu1 %483 }
  0xf5   : > { %2365 = vpow2.f32 %v2119_v10  ;;  %v2697_v18 = vadd.f32 %v1134_v15, %v439_v8  ;;  %v2095_v19 = vmul.f32 -1.442695, %v2691_v12  ;;  %v479_v5 = vpop.permute.xlu0 %478 }
  0xf6   : > { %v2122_v20 = vmul.f32 -1.442695, %v2693_v14  ;;  %2367 = vpow2.f32 %v2094_v7  ;;  %v2096_v21 = vmul.f32 -1.442695, %v2695_v16  ;;  %v634_v22 = vpop.f32.mrb[6].mxu0 }
  0xf7   : > { %v2121_v23 = vmul.f32 -1.442695, %v2697_v18  ;;  %2369 = vpow2.f32 %v2095_v19  ;;  %v2703_v24 = vadd.f32 %v634_v22, %v464_v17  ;;  %v636_v25 = vpop.f32.mrb[7].mxu0 }
  0xf8   : > { %2371 = vpow2.f32 %v2122_v20  ;;  %v2705_v26 = vadd.f32 %v636_v25, %v464_v17 }
  0xf9   : > { %v2358_v28 = vpop.eup %2357  ;;  %2373 = vpow2.f32 %v2121_v23  ;;  %v2097_v29 = vmul.f32 -1.442695, %v2703_v24 }
  0xfa   : > { %v2360_v30 = vpop.eup %2359  ;;  %v711_v31 = vadd.f32 1.0, %v2358_v28  ;;  %2375 = vpow2.f32 %v2096_v21  ;;  %v2098_v32 = vmul.f32 -1.442695, %v2705_v26  ;;  %v640_v33 = vpop.f32.mrb[8].mxu0 }
  0xfb   : > { %v712_v34 = vadd.f32 1.0, %v2360_v30  ;;  %2377 = vpow2.f32 %v2097_v29  ;;  %v642_v35 = vpop.f32.mrb[9].mxu0  ;;  %v2709_v36 = vadd.f32 %v640_v33, %v469_v27 }
  0xfc   : > { %2379 = vrcp.f32 %v711_v31  ;;  %v2714_v55 = vadd.f32 %v642_v35, %v469_v27 }
  0xfd   : > { %v2362_v37 = vpop.eup %2361  ;;  %2381 = vrcp.f32 %v712_v34  ;;  %v2099_v38 = vmul.f32 -1.442695, %v2709_v36 }
  0xfe   : > { %v2364_v39 = vpop.eup %2363  ;;  %v713_v40 = vadd.f32 1.0, %v2362_v37  ;;  %2383 = vpow2.f32 %v2098_v32  ;;  %v646_v41 = vpop.f32.mrb[10].mxu0  ;;  %v2100_v11 = vmul.f32 -1.442695, %v2714_v55 }
  0xff   : > { %v2366_v43 = vpop.eup %2365  ;;  %v1156_v44 = vadd.f32 1.0, %v2364_v39  ;;  %2385 = vpow2.f32 %v2099_v38  ;;  %v648_v45 = vpop.f32.mrb[11].mxu0  ;;  %v2712_v51 = vadd.f32 %v646_v41, %v474_v42 }
 0x100   : > { %v2368_v46 = vpop.eup %2367  ;;  %v1155_v47 = vadd.f32 1.0, %v2366_v43  ;;  %2387 = vrcp.f32 %v713_v40  ;;  %v2716_v1 = vadd.f32 %v648_v45, %v474_v42 }
 0x101   : > { %v2370_v48 = vpop.eup %2369  ;;  %2389 = vrcp.f32 %v1156_v44  ;;  %v714_v49 = vadd.f32 1.0, %v2368_v46  ;;  %v2101_v8 = vmul.f32 -1.442695, %v2712_v51 }
 0x102   : > { %v2372_v53 = vpop.eup %2371  ;;  %2391 = vrcp.f32 %v1155_v47  ;;  %v715_v54 = vadd.f32 1.0, %v2370_v48  ;;  %v652_v56 = vpop.f32.mrb[12].mxu0  ;;  %v2102_v22 = vmul.f32 -1.442695, %v2716_v1 }
 0x103   : > { %v2374_v57 = vpop.eup %2373  ;;  %v1158_v58 = vadd.f32 1.0, %v2372_v53  ;;  %2393 = vrcp.f32 %v714_v49  ;;  %v654_v59 = vpop.f32.mrb[13].mxu0  ;;  %v2722_v19 = vadd.f32 %v652_v56, %v479_v5 }
 0x104   : > { %v2376_v60 = vpop.eup %2375  ;;  %v1157_v62 = vadd.f32 1.0, %v2374_v57  ;;  %2395 = vrcp.f32 %v715_v54  ;;  %v2725_v23 = vadd.f32 %v654_v59, %v479_v5 }
 0x105   : > { %v2378_v6 = vpop.eup %2377  ;;  %2397 = vrcp.f32 %v1158_v58  ;;  %v716_v7 = vadd.f32 1.0, %v2376_v60  ;;  %v2103_v34 = vmul.f32 -1.442695, %v2722_v19 }
 0x106   : > { %v2380_v9 = vpop.eup %2379  ;;  %2399 = vrcp.f32 %v1157_v62  ;;  %v717_v10 = vadd.f32 1.0, %v2378_v6  ;;  %v658_v13 = vpop.f32.mrb[14].mxu0  ;;  %v401_v62 = vld [vmem:[%s2955_s5 + $0x68] sm:$0xff] }
 0x107   : > { %v2382_v15 = vpop.eup %2381  ;;  %2401 = vrcp.f32 %v716_v7  ;;  %v2720_v17 = vadd.f32 %v658_v13, %v484_v4  ;;  %v660_v20 = vpop.f32.mrb[15].mxu0  ;;  %v735_v27 = vmul.f32 %v2380_v9, %v2661_v50  ;;  %v2104_v50 = vmul.f32 -1.442695, %v2725_v23 }
 0x108   : > { %v2384_v21 = vpop.eup %2383  ;;  %2403 = vrcp.f32 %v717_v10  ;;  %v2728_v29 = vadd.f32 %v660_v20, %v484_v4  ;;  %v736_v38 = vmul.f32 %v2382_v15, %v2663_v52  ;;  %v403_v10 = vld [vmem:[%s2955_s5 + $0x78] sm:$0xff]  ;;  %v388_v15 = vld [vmem:[%s2955_s5] sm:$0xff] }
 0x109   : > { %v2386_v25 = vpop.eup %2385  ;;  %v718_v28 = vadd.f32 1.0, %v2384_v21  ;;  %2405 = vpow2.f32 %v2101_v8  ;;  %v2105_v31 = vmul.f32 -1.442695, %v2720_v17 }
 0x10a   : > { %v2388_v30 = vpop.eup %2387  ;;  %2407 = vpow2.f32 %v2100_v11  ;;  %v2106_v42 = vmul.f32 -1.442695, %v2728_v29  ;;  %v767_v44 = vadd.f32 1.0, %v2386_v25  ;;  %v389_v25 = vld [vmem:[%s2955_s5 + $0x8] sm:$0xff] }
 0x10b   : > { %v2390_v32 = vpop.eup %2389  ;;  %v737_v33 = vmul.f32 %v2388_v30, %v2673_v61  ;;  %2409 = vrcp.f32 %v718_v28 }
 0x10c   : > { %v2392_v35 = vpop.eup %2391  ;;  %v1168_v37 = vmul.f32 %v2390_v32, %v2675_v63  ;;  %2411 = vpow2.f32 %v2102_v22 }
 0x10d   : > { %v2394_v39 = vpop.eup %2393  ;;  %v1167_v40 = vmul.f32 %v2392_v35, %v2679_v3  ;;  %v2242_v41 = vpack.c.bf16 %v737_v33, %v735_v27  ;;  %2413 = vpow2.f32 %v2105_v31 }
 0x10e   : > { %v2396_v43 = vpop.eup %2395  ;;  %v738_v61 = vmul.f32 %v2394_v39, %v2677_v2  ;;  %2415 = vpow2.f32 %v2103_v34 }
 0x10f   : > { %v2398_v45 = vpop.eup %2397  ;;  %v2264_v46 = vpack.c.bf16 %v1168_v37, %v1167_v40  ;;  %2417 = vpow2.f32 %v2104_v50  ;;  %v739_v49 = vmul.f32 %v2396_v43, %v2691_v12  ;;  %v395_v43 = vld [vmem:[%s2955_s5 + $0x38] sm:$0xff] }
 0x110   : > { %v2400_v63 = vpop.eup %2399  ;;  %v1170_v52 = vmul.f32 %v2398_v45, %v2693_v14  ;;  %v2240_v47 = vpack.c.bf16 %v738_v61, %v736_v38  ;;  %2419 = vpow2.f32 %v2106_v42  ;;  %v442_v61 = vld [vmem:[%s2957_s7 + $0xa8] sm:$0xff] }
 0x111   : > { %v2402_v48 = vpop.eup %2401  ;;  %v1169_v3 = vmul.f32 %v2400_v63, %v2697_v18  ;;  %2265 = vmatprep.subr.bf16.mxu1 %v2264_v46  ;;  %2421 = vrcp.f32 %v767_v44  ;;  %v441_v44 = vld [vmem:[%s2957_s7 + $0xa0] sm:$0xff] }
 0x112   : > { %v2404_v53 = vpop.eup %2403  ;;  %2267 = vmatpush3.bf16.msra.mxu1 %v2264_v46  ;;  %2241 = vmatprep.subr.bf16.mxu0 %v2240_v47  ;;  %v740_v14 = vmul.f32 %v2402_v48, %v2695_v16  ;;  %v444_v47 = vld [vmem:[%s2957_s7 + $0xb8] sm:$0xff]  ;;  %v443_v48 = vld [vmem:[%s2957_s7 + $0xb0] sm:$0xff] }
 0x113   : > { %v2406_v2 = vpop.eup %2405  ;;  %v741_v54 = vmul.f32 %v2404_v53, %v2703_v24  ;;  %v2268_v56 = vpack.c.bf16 %v1170_v52, %v1169_v3  ;;  %2243 = vmatpush1.bf16.msra.mxu0 %v2242_v41  ;;  %v402_v24 = vld [vmem:[%s2955_s5 + $0x70] sm:$0xff]  ;;  %v391_v41 = vld [vmem:[%s2955_s5 + $0x18] sm:$0xff] }
 0x114   : > { %v2408_v57 = vpop.eup %2407  ;;  %v769_v58 = vadd.f32 1.0, %v2406_v2 }
 0x115   : > { %v2410_v59 = vpop.eup %2409  ;;  %v2246_v60 = vpack.c.bf16 %v741_v54, %v739_v49  ;;  %v768_v18 = vadd.f32 1.0, %v2408_v57  ;;  %2269 = vmatprep.subr.bf16.mxu1 %v2268_v56  ;;  %v445_v54 = vld [vmem:[%s2957_s7 + $0xc0] sm:$0xf] }
 0x116   : > { %v742_v12 = vmul.f32 %v2410_v59, %v2705_v26  ;;  %2423 = vrcp.f32 %v769_v58  ;;  %2271 = vmatpush3.bf16.msra.mxu1 %v2268_v56  ;;  %v2412_v4 = vpop.eup %2411 }
 0x117   : > { %2425 = vrcp.f32 %v768_v18  ;;  %v2414_v16 = vpop.eup %2413  ;;  %v770_v5 = vadd.f32 1.0, %v2412_v4  ;;  %v489_v4 = vpop.permute.xlu0 %488 }
 0x118   : > { %v2244_v6 = vpack.c.bf16 %v742_v12, %v740_v14  ;;  %v2416_v7 = vpop.eup %2415  ;;  %v773_v8 = vadd.f32 1.0, %v2414_v16 }
 0x119   : > { %2204 = vmatmul.mubr.msk.f32.vlgmr.msra.gmra.mrb[4].mxu1 %vm799_vm0, %v401_v62  ;;  %v2418_v26 = vpop.eup %2417  ;;  %2427 = vrcp.f32 %v770_v5  ;;  %v771_v9 = vadd.f32 1.0, %v2416_v7  ;;  %v494_v62 = vpop.permute.xlu1 %493 }
 0x11a   : > { %2245 = vmatprep.subr.bf16.mxu0 %v2244_v6  ;;  %2206 = vmatprep.mubr.msk.f32.mxu1 %vm799_vm0, %v402_v24  ;;  %v2420_v11 = vpop.eup %2419  ;;  %2429 = vrcp.f32 %v773_v8  ;;  %v772_v13 = vadd.f32 1.0, %v2418_v26 }
 0x11b   : > { %2247 = vmatpush1.bf16.msra.mxu0 %v2246_v60  ;;  %v2422_v20 = vpop.eup %2421  ;;  %2431 = vrcp.f32 %v771_v9  ;;  %v774_v21 = vadd.f32 1.0, %v2420_v11  ;;  %v1021_v16 = vpop.permute.xlu0 %1020 }
 0x11c   : > { %2433 = vrcp.f32 %v772_v13  ;;  %v791_v22 = vmul.f32 %v2422_v20, %v2709_v36  ;;  %v390_v36 = vld [vmem:[%s2955_s5 + $0x10] sm:$0xff] }
 0x11d   : > { %2207 = vmatmul.mubr.msk.f32.gmra.mrb[6].mxu1 %vm799_vm0, %v403_v10  ;;  %2435 = vrcp.f32 %v774_v21  ;;  %v1026_v24 = vpop.permute.xlu1 %1025 }
 0x11e   : > { %2107 = vmatmul.mubr.msk.f32.vlgmr.msra.gmra.mrb[16].mxu0 %vm799_vm0, %v388_v15  ;;  %1372 = vmatprep.mubr.f32.mxu1 %v2453_v0 }
 0x11f   : > { %882 = vmatprep.mubr.f32.mxu0 %v2453_v0  ;;  %v499_v6 = vpop.permute.xlu0 %498 }
 0x120   : > { %v2424_v27 = vpop.eup %2423 }
 0x121   : > { %v2426_v28 = vpop.eup %2425  ;;  %v793_v30 = vmul.f32 %v2424_v27, %v2712_v51  ;;  %v504_v5 = vpop.permute.xlu1 %503 }
 0x122   : > { %2108 = vmatmul.mubr.msk.f32.gmra.mrb[18].mxu0 %vm799_vm0, %v389_v25  ;;  %v792_v31 = vmul.f32 %v2426_v28, %v2714_v55 }
 0x123   : > { %v2250_v32 = vpack.c.bf16 %v793_v30, %v791_v22  ;;  %888 = vmatprep.mubr.f32.mxu0 %v2453_v0  ;;  %v2428_v33 = vpop.eup %2427  ;;  %v1031_v11 = vpop.permute.xlu0 %1030 }
 0x124   : > { %v2430_v34 = vpop.eup %2429  ;;  %v794_v35 = vmul.f32 %v2428_v33, %v2716_v1 }
 0x125   : > { %v2432_v37 = vpop.eup %2431  ;;  %v797_v38 = vmul.f32 %v2430_v34, %v2720_v17  ;;  %v1036_v26 = vpop.permute.xlu1 %1035 }
 0x126   : > { %2109 = vmatmul.mubr.msk.f32.gmra.mrb[20].mxu0 %vm799_vm0, %v390_v36  ;;  %v2434_v51 = vpop.eup %2433  ;;  %v795_v50 = vmul.f32 %v2432_v37, %v2722_v19  ;;  %v2248_v55 = vpack.c.bf16 %v794_v35, %v792_v31  ;;  %v392_v19 = vld [vmem:[%s2955_s5 + $0x20] sm:$0xff] }
 0x127   : > { %894 = vmatprep.mubr.f32.mxu0 %v2453_v0  ;;  %v2436_v39 = vpop.eup %2435  ;;  %v796_v40 = vmul.f32 %v2434_v51, %v2725_v23  ;;  %v393_v23 = vld [vmem:[%s2955_s5 + $0x28] sm:$0xff] }
 0x128   : > { %v2254_v42 = vpack.c.bf16 %v797_v38, %v795_v50  ;;  %v798_v1 = vmul.f32 %v2436_v39, %v2728_v29  ;;  %2249 = vmatprep.subr.bf16.mxu0 %v2248_v55  ;;  %v394_v29 = vld [vmem:[%s2955_s5 + $0x30] sm:$0xff] }
 0x129   : > { %2251 = vmatpush1.bf16.msra.mxu0 %v2250_v32 }
 0x12a   : > { %2110 = vmatmul.mubr.msk.f32.gmra.mrb[22].mxu0 %vm799_vm0, %v391_v41  ;;  %v2252_v17 = vpack.c.bf16 %v798_v1, %v796_v40 }
 0x12b   : > { %985 = vmatprep.mubr.f32.mxu0 %v2453_v0 }
 0x12c   : > { %2253 = vmatprep.subr.bf16.mxu0 %v2252_v17 }
 0x12d   : > { %2255 = vmatpush1.bf16.msra.mxu0 %v2254_v42 }
 0x130   : > { %2111 = vmatmul.mubr.msk.f32.vlgmr.msra.gmra.mrb[16].mxu0 %vm799_vm0, %v392_v19 }
 0x131   : > { %991 = vmatprep.mubr.f32.mxu0 %v2453_v0 }
 0x134   : > { %2112 = vmatmul.mubr.msk.f32.gmra.mrb[18].mxu0 %vm799_vm0, %v393_v23 }
 0x135   : > { %997 = vmatprep.mubr.f32.mxu0 %v2453_v0 }
 0x138   : > { %2113 = vmatmul.mubr.msk.f32.gmra.mrb[20].mxu0 %vm799_vm0, %v394_v29  ;;  %v408_v29 = vld [vmem:[%s2955_s5 + $0xa0] sm:$0xff] }
 0x139   : > { %1003 = vmatprep.mubr.f32.mxu0 %v2453_v0 }
 0x13c   : > { %2114 = vmatmul.mubr.msk.f32.gmra.mrb[22].mxu0 %vm799_vm0, %v395_v43  ;;  %v409_v43 = vld [vmem:[%s2955_s5 + $0xa8] sm:$0xff] }
 0x13d   : > { %1960 = vmatprep.mubr.f32.mxu0 %v2453_v0 }
 0x1ec   : > { %v2205_v45 = vpop.f32.mrb[4].mxu1 }
 0x1ed   : > { %v1255_v46 = vadd.f32 %v2205_v45, %v442_v61  ;;  %v1249_v63 = vpop.f32.mrb[5].mxu1  ;;  %v404_v61 = vld [vmem:[%s2955_s5 + $0x80] sm:$0xff]  ;;  %v2456_v45 = vmov 0.0|0.0  }
 0x1ee   : > { %v1250_v52 = vadd.f32 %v1249_v63, %v441_v44  ;;  %v2281_v44 = vpack.c.bf16 %v409_v43, %v408_v29  ;;  %v411_v63 = vld [vmem:[%s2955_s5 + $0xb8] sm:$0xff] }
 0x1ef   : > { %1275 = vperm.xlu1 %2356, %v1255_v46   ;;  %v410_v46 = vld [vmem:[%s2955_s5 + $0xb0] sm:$0xff] }
 0x1f0   : > { %v2208_v3 = vpop.f32.mrb[6].mxu1  ;;  %1270 = vperm.xlu0 %2355, %v1250_v52   ;;  %v405_v52 = vld [vmem:[%s2955_s5 + $0x88] sm:$0xff] }
 0x1f1   : > { %v1265_v49 = vadd.f32 %v2208_v3, %v444_v47  ;;  %v1259_v53 = vpop.f32.mrb[7].mxu1  ;;  %v2284_v47 = vpack.c.bf16 %v411_v63, %v410_v46  ;;  %v407_v3 = vld [vmem:[%s2955_s5 + $0x98] sm:$0xff] }
 0x1f2   : > { %v1260_v2 = vadd.f32 %v1259_v53, %v443_v48  ;;  %v406_v48 = vld [vmem:[%s2955_s5 + $0x90] sm:$0xff]  ;;  %v368_v53 = vld [vmem:[%s352_s30] sm:$0xff] }
 0x1f3   : > { %1285 = vperm.xlu1 %2356, %v1265_v49   ;;  %v367_v49 = vld [vmem:[%s347_s25] sm:$0xff] }
 0x1f4   : > { %1280 = vperm.xlu0 %2355, %v1260_v2   ;;  %v369_v2 = vld [vmem:[%s352_s30 + $0x8] sm:$0xff] }
 0x1f8   : > { %1890 = vperm.xlu0 %2355, %v445_v54   ;;  %v2286_v54 = vpack.c.bf16 %v369_v2, %v368_v53 }
 0x203   : > { %v987_v56 = vpop.f32.mrb[16].mxu0 }
 0x204   : > { %v989_v57 = vpop.f32.mrb[17].mxu0  ;;  %v2318_v9 = vadd.f32 %v987_v56, %v489_v4  ;;  %v370_v56 = vld [vmem:[%s352_s30 + $0x10] sm:$0xff] }
 0x205   : > { %v2319_v10 = vadd.f32 %v989_v57, %v489_v4  ;;  %v371_v57 = vld [vmem:[%s352_s30 + $0x18] sm:$0xff] }
 0x206   : > { %v1038_v22 = vadd.f32 %v2318_v9, %v1021_v16 }
 0x207   : > { %v993_v14 = vpop.f32.mrb[18].mxu0  ;;  %v1039_v25 = vadd.f32 %v2319_v10, %v1021_v16 }
 0x208   : > { %v995_v58 = vpop.f32.mrb[19].mxu0  ;;  %v2320_v7 = vadd.f32 %v993_v14, %v494_v62  ;;  %v2290_v14 = vpack.c.bf16 %v371_v57, %v370_v56 }
 0x209   : > { %v2321_v8 = vadd.f32 %v995_v58, %v494_v62  ;;  %v412_v58 = vld [vmem:[%s2955_s5 + $0xc0] sm:$0xff] }
 0x20a   : > { %v1040_v13 = vadd.f32 %v2320_v7, %v1026_v24 }
 0x20b   : > { %v999_v59 = vpop.f32.mrb[20].mxu0  ;;  %v1041_v15 = vadd.f32 %v2321_v8, %v1026_v24 }
 0x20c   : > { %v1001_v60 = vpop.f32.mrb[21].mxu0  ;;  %v2322_v27 = vadd.f32 %v999_v59, %v499_v6  ;;  %v413_v59 = vld [vmem:[%s2955_s5 + $0xc8] sm:$0xff] }
 0x20d   : > { %v2323_v28 = vadd.f32 %v1001_v60, %v499_v6  ;;  %v414_v60 = vld [vmem:[%s2955_s5 + $0xd0] sm:$0xff] }
 0x20e   : > { %v1042_v38 = vadd.f32 %v2322_v27, %v1031_v11 }
 0x20f   : > { %v1005_v18 = vpop.f32.mrb[22].mxu0  ;;  %v1043_v51 = vadd.f32 %v2323_v28, %v1031_v11 }
 0x210   : > { %v1007_v12 = vpop.f32.mrb[23].mxu0  ;;  %v2324_v20 = vadd.f32 %v1005_v18, %v504_v5  ;;  %v415_v18 = vld [vmem:[%s2955_s5 + $0xd8] sm:$0xff] }
 0x211   : > { %v2325_v21 = vadd.f32 %v1007_v12, %v504_v5 }
 0x212   : > { %v1044_v35 = vadd.f32 %v2324_v20, %v1036_v26 }
 0x213   : > { %v1045_v37 = vadd.f32 %v2325_v21, %v1036_v26 }
 0x26e   : > { %v1276_v30 = vpop.permute.xlu1 %1275 }
 0x26f   : > { %v2821_v31 = vadd.f32 %v1276_v30, %v1040_v13  ;;  %v2823_v32 = vadd.f32 %v1276_v30, %v1041_v15  ;;  %v1271_v36 = vpop.permute.xlu0 %1270 }
 0x270   : > { %v2825_v33 = vadd.f32 %v1271_v36, %v1038_v22  ;;  %v2827_v34 = vadd.f32 %v1271_v36, %v1039_v25 }
 0x272   : > { %v2272_v50 = vpack.c.bf16 %v2823_v32, %v2827_v34  ;;  %v2274_v55 = vpack.c.bf16 %v2821_v31, %v2825_v33  ;;  %v1286_v39 = vpop.permute.xlu1 %1285 }
 0x273   : > { %v2833_v40 = vadd.f32 %v1286_v39, %v1044_v35  ;;  %v2835_v41 = vadd.f32 %v1286_v39, %v1045_v37  ;;  %v1281_v42 = vpop.permute.xlu0 %1280 }
 0x274   : > { %v2837_v1 = vadd.f32 %v1281_v42, %v1042_v38  ;;  %v2839_v17 = vadd.f32 %v1281_v42, %v1043_v51  ;;  %2273 = vmatprep.subr.bf16.mxu1 %v2272_v50 }
 0x275   : > { %2275 = vmatpush1.bf16.msra.mxu1 %v2274_v55 }
 0x276   : > { %v2276_v19 = vpack.c.bf16 %v2835_v41, %v2839_v17  ;;  %v2278_v23 = vpack.c.bf16 %v2833_v40, %v2837_v1 }
 0x278   : > { %2277 = vmatprep.subr.bf16.mxu1 %v2276_v19 }
 0x279   : > { %2279 = vmatpush1.bf16.msra.mxu1 %v2278_v23 }
 0x27a   : > { %2280 = vmatprep.subr.bf16.mxu1 %v2456_v45 }
 0x27c   : > { %2127 = vmatmul.mubr.msk.f32.vlgmr.msra.gmra.mrb[8].mxu1 %vm799_vm0, %v404_v61 }
 0x27d   : > { %1378 = vmatprep.mubr.f32.mxu1 %v2453_v0  ;;  %2282 = vmatpush3.bf16.msra.mxu1 %v2281_v44 }
 0x27e   : > { %2283 = vmatprep.subr.bf16.mxu1 %v2456_v45 }
 0x280   : > { %2128 = vmatmul.mubr.msk.f32.gmra.mrb[10].mxu1 %vm799_vm0, %v405_v52 }
 0x281   : > { %1384 = vmatprep.mubr.f32.mxu1 %v2453_v0  ;;  %2285 = vmatpush3.bf16.msra.mxu1 %v2284_v47 }
 0x282   : > { %2287 = vmatprep.subr.bf16.mxu1 %v2286_v54 }
 0x284   : > { %2129 = vmatmul.mubr.msk.f32.gmra.mrb[12].mxu1 %vm799_vm0, %v406_v48 }
 0x285   : > { %1390 = vmatprep.mubr.f32.mxu1 %v2453_v0 }
 0x288   : > { %2130 = vmatmul.mubr.msk.f32.gmra.mrb[14].mxu1 %vm799_vm0, %v407_v3 }
 0x289   : > { %2217 = vmatprep.mubr.msk.f32.mxu1 %vm2457_vm5, %v2453_v0 }
 0x28c   : > { %2218 = vmatmul.mubr.msk.f32.vlgmr.msra.gmra.mrb[16].mxu1 %vm799_vm0, %v367_v49 }
 0x28d   : > { %2289 = vmatpush3.bf16.msra.mxu1 %v2286_v54  ;;  %2228 = vmatprep.mubr.msk.f32.mxu1 %vm799_vm0, %v412_v58 }
 0x28e   : > { %2291 = vmatprep.subr.bf16.mxu1 %v2290_v14 }
 0x291   : > { %2293 = vmatpush3.bf16.msra.mxu1 %v2290_v14 }
 0x294   : > { %2229 = vmatmul.mubr.msk.f32.vlgmr.msra.gmra.mrb[18].mxu1 %vm799_vm0, %v413_v59 }
 0x295   : > { %2231 = vmatprep.mubr.msk.f32.mxu1 %vm799_vm0, %v414_v60 }
 0x298   : > { %2232 = vmatmul.mubr.msk.f32.gmra.mrb[20].mxu1 %vm799_vm0, %v415_v18 }
 0x299   : > { %1634 = vmatprep.mubr.f32.mxu1 %v2453_v0 }
 0x34f   : > { %v1374_v12 = vpop.f32.mrb[8].mxu1 }
 0x350   : > { %v1376_v62 = vpop.f32.mrb[9].mxu1 }
 0x353   : > { %v1380_v4 = vpop.f32.mrb[10].mxu1 }
 0x354   : > { %v2296_v24 = vpack.c.bf16 %v1380_v4, %v1374_v12  ;;  %v1382_v16 = vpop.f32.mrb[11].mxu1 }
 0x355   : > { %v2294_v5 = vpack.c.bf16 %v1382_v16, %v1376_v62 }
 0x357   : > { %v1386_v6 = vpop.f32.mrb[12].mxu1  ;;  %2295 = vmatprep.subr.bf16.mxu1 %v2294_v5 }
 0x358   : > { %v1388_v7 = vpop.f32.mrb[13].mxu1  ;;  %2297 = vmatpush1.bf16.msra.mxu1 %v2296_v24 }
 0x35b   : > { %v1392_v8 = vpop.f32.mrb[14].mxu1 }
 0x35c   : > { %v2300_v26 = vpack.c.bf16 %v1392_v8, %v1386_v6  ;;  %v1394_v9 = vpop.f32.mrb[15].mxu1 }
 0x35d   : > { %v2298_v10 = vpack.c.bf16 %v1394_v9, %v1388_v7 }
 0x35f   : > { %2299 = vmatprep.subr.bf16.mxu1 %v2298_v10  ;;  %v1466_v11 = vpop.f32.mrb[16].mxu1 }
 0x360   : > { %2301 = vmatpush1.bf16.msra.mxu1 %v2300_v26  ;;  %v2219_v13 = vpop.f32.mrb[17].mxu1 }
 0x361   : > { %v416_v13 = vld [vmem:[%s2955_s5 + $0xe0] sm:$0xff] }
 0x363   : > { %2136 = vmatmul.mubr.msk.f32.vlgmr.msra.gmra.mrb[22].mxu1 %vm799_vm0, %v1466_v11 }
 0x364   : > { %1754 = vmatprep.mubr.f32.mxu1 %v2453_v0 }
 0x367   : > { %v2230_v15 = vpop.f32.mrb[18].mxu1 }
 0x368   : > { %v1548_v20 = vpop.f32.mrb[19].mxu1 }
 0x36b   : > { %v2233_v21 = vpop.f32.mrb[20].mxu1 }
 0x36c   : > { %v1558_v22 = vpop.f32.mrb[21].mxu1 }
 0x436   : > { %v1636_v25 = vpop.f32.mrb[22].mxu1 }
 0x437   : > { %v1641_v27 = vmul.f32 0.17677669, %v1636_v25  ;;  %v1638_v28 = vpop.f32.mrb[23].mxu1 }
 0x438   : > { %v1642_v30 = vmul.f32 0.17677669, %v1638_v28 }
 0x439   : > { %v1643_v36 = vrot.slane %v1641_v27, 4 }
 0x43a   : > { %v1649_v35 = vrot.slane %v1642_v30, 4 }
 0x43b   : > { %v1644_v37 = vmax.f32 %v1641_v27, %v1643_v36 }
 0x43c   : > { %v1650_v38 = vmax.f32 %v1642_v30, %v1649_v35 }
 0x43d   : > { %v1645_v51 = vrot.slane %v1644_v37, 2 }
 0x43e   : > { %v1651_v50 = vrot.slane %v1650_v38, 2 }
 0x43f   : > { %v1646_v55 = vmax.f32 %v1644_v37, %v1645_v51 }
 0x440   : > { %v1652_v39 = vmax.f32 %v1650_v38, %v1651_v50 }
 0x441   : > { %v1647_v42 = vrot.slane %v1646_v55, 1 }
 0x442   : > { %v1653_v19 = vrot.slane %v1652_v39, 1 }
 0x443   : > { %v1648_v23 = vmax.f32 %v1646_v55, %v1647_v42 }
 0x444   : > { %v1654_v29 = vmax.f32 %v1652_v39, %v1653_v19 }
 0x445   : > { %v1655_v43 = vsub.f32 %v1641_v27, %v1648_v23 }
 0x446   : > { %v1656_v61 = vsub.f32 %v1642_v30, %v1654_v29  ;;  %v1891_v29 = vpop.permute.xlu0 %1890 }
 0x447   : > { %v1657_v44 = vmul.f32 1.442695, %v1655_v43 }
 0x448   : > { %v1659_v45 = vmul.f32 1.442695, %v1656_v61 }
 0x449   : > { %2437 = vpow2.f32 %v1657_v44 }
 0x44a   : > { %2439 = vpow2.f32 %v1659_v45 }
 0x453   : > { %v2438_v46 = vpop.eup %2437 }
 0x454   : > { %v2440_v63 = vpop.eup %2439  ;;  %v1661_v52 = vrot.slane %v2438_v46, 4 }
 0x455   : > { %v1667_v47 = vrot.slane %v2440_v63, 4 }
 0x456   : > { %v1662_v48 = vadd.f32 %v2438_v46, %v1661_v52 }
 0x457   : > { %v1668_v3 = vadd.f32 %v2440_v63, %v1667_v47 }
 0x458   : > { %v1663_v49 = vrot.slane %v1662_v48, 2 }
 0x459   : > { %v1669_v53 = vrot.slane %v1668_v3, 2 }
 0x45a   : > { %v1664_v2 = vadd.f32 %v1663_v49, %v1662_v48 }
 0x45b   : > { %v1670_v54 = vadd.f32 %v1669_v53, %v1668_v3 }
 0x45c   : > { %v1665_v56 = vrot.slane %v1664_v2, 1 }
 0x45d   : > { %v1671_v57 = vrot.slane %v1670_v54, 1 }
 0x45e   : > { %v1666_v14 = vadd.f32 %v1665_v56, %v1664_v2 }
 0x45f   : > { %v1672_v58 = vadd.f32 %v1671_v57, %v1670_v54 }
 0x460   : > { %2441 = vrcp.f32 %v1666_v14 }
 0x461   : > { %2443 = vrcp.f32 %v1672_v58 }
 0x46a   : > { %v2442_v59 = vpop.eup %2441 }
 0x46b   : > { %v2444_v60 = vpop.eup %2443  ;;  %v1675_v12 = vmul.f32 %v2442_v59, %v2438_v46 }
 0x46c   : > { %v1676_v18 = vmul.f32 %v2444_v60, %v2440_v63 }
 0x46e   : > { %1690 = vmatprep.subr.mxu1 %v1676_v18 }
 0x46f   : > { %1691 = vmatpush1.msra.mxu1 %v1675_v12 }
 0x470   : > { %2137 = vmatmul.mubr.msk.f32.vlgmr.msra.gmra.mrb[24].mxu1 %vm1677_vm6, %v1548_v20  ;;  %v418_v20 = vld [vmem:[%s2955_s5 + $0xf0] sm:$0xff] }
 0x471   : > { %1760 = vmatprep.mubr.f32.mxu1 %v2453_v0 }
 0x474   : > { %2138 = vmatmul.mubr.msk.f32.gmra.mrb[26].mxu1 %vm1677_vm6, %v2230_v15  ;;  %v417_v15 = vld [vmem:[%s2955_s5 + $0xe8] sm:$0xff] }
 0x475   : > { %1766 = vmatprep.mubr.f32.mxu1 %v2453_v0 }
 0x478   : > { %2139 = vmatmul.mubr.msk.f32.gmra.mrb[28].mxu1 %vm1677_vm6, %v1558_v22 }
 0x479   : > { %1772 = vmatprep.mubr.f32.mxu1 %v2453_v0 }
 0x47c   : > { %2140 = vmatmul.mubr.msk.f32.gmra.mrb[30].mxu1 %vm1677_vm6, %v2233_v21  ;;  %v419_v21 = vld [vmem:[%s2955_s5 + $0xf8] sm:$0xff] }
 0x47d   : > { %1855 = vmatprep.mubr.f32.mxu1 %v2453_v0 }
 0x543   : > { %v1756_v62 = vpop.f32.mrb[24].mxu1 }
 0x544   : > { %v1758_v4 = vpop.f32.mrb[25].mxu1 }
 0x547   : > { %v1762_v24 = vpop.f32.mrb[26].mxu1 }
 0x548   : > { %v2304_v16 = vpack.c.bf16 %v1762_v24, %v1756_v62  ;;  %v1764_v5 = vpop.f32.mrb[27].mxu1 }
 0x549   : > { %v2302_v6 = vpack.c.bf16 %v1764_v5, %v1758_v4 }
 0x54b   : > { %v1768_v7 = vpop.f32.mrb[28].mxu1  ;;  %2303 = vmatprep.subr.bf16.mxu1 %v2302_v6 }
 0x54c   : > { %v1770_v8 = vpop.f32.mrb[29].mxu1  ;;  %2305 = vmatpush1.bf16.msra.mxu1 %v2304_v16 }
 0x54f   : > { %v1774_v26 = vpop.f32.mrb[30].mxu1 }
 0x550   : > { %v2308_v9 = vpack.c.bf16 %v1774_v26, %v1768_v7  ;;  %v1776_v10 = vpop.f32.mrb[31].mxu1 }
 0x551   : > { %v2306_v11 = vpack.c.bf16 %v1776_v10, %v1770_v8 }
 0x553   : > { %2307 = vmatprep.subr.bf16.mxu1 %v2306_v11 }
 0x554   : > { %2309 = vmatpush1.bf16.msra.mxu1 %v2308_v9 }
 0x557   : > { %2141 = vmatmul.mubr.msk.f32.vlgmr.msra.gmra.mrb[32].mxu1 %vm799_vm0, %v416_v13 }
 0x558   : > { %1861 = vmatprep.mubr.f32.mxu1 %v2453_v0 }
 0x55b   : > { %2142 = vmatmul.mubr.msk.f32.gmra.mrb[34].mxu1 %vm799_vm0, %v417_v15 }
 0x55c   : > { %1867 = vmatprep.mubr.f32.mxu1 %v2453_v0 }
 0x55f   : > { %2143 = vmatmul.mubr.msk.f32.gmra.mrb[36].mxu1 %vm799_vm0, %v418_v20 }
 0x560   : > { %1873 = vmatprep.mubr.f32.mxu1 %v2453_v0 }
 0x563   : > { %2144 = vmatmul.mubr.msk.f32.gmra.mrb[38].mxu1 %vm799_vm0, %v419_v21 }
 0x62a   : > { %v1857_v22 = vpop.f32.mrb[32].mxu1 }
 0x62b   : > { %v1859_v25 = vpop.f32.mrb[33].mxu1  ;;  %v1880_v28 = vadd.f32 %v1857_v22, %v2825_v33 }
 0x62c   : > { %v1881_v35 = vadd.f32 %v1859_v25, %v2827_v34 }
 0x62e   : > { %v1863_v27 = vpop.f32.mrb[34].mxu1 }
 0x62f   : > { %v1882_v30 = vadd.f32 %v1863_v27, %v2821_v31  ;;  %v1865_v36 = vpop.f32.mrb[35].mxu1 }
 0x630   : > { %v1883_v37 = vadd.f32 %v1865_v36, %v2823_v32  ;;  %v420_v32 = vld [vmem:[%s2956_s6] sm:$0xf] }
 0x631   : > { %v2312_v38 = vpack.c.bf16 %v1882_v30, %v1880_v28 }
 0x632   : > { %v2310_v0 = vpack.c.bf16 %v1883_v37, %v1881_v35  ;;  %v1869_v51 = vpop.f32.mrb[36].mxu1 }
 0x633   : > { %v1871_v50 = vpop.f32.mrb[37].mxu1  ;;  %v1884_v39 = vadd.f32 %v1869_v51, %v2837_v1 }
 0x634   : > { %2311 = vmatprep.subr.bf16.mxu0 %v2310_v0  ;;  %v1885_v31 = vadd.f32 %v1871_v50, %v2839_v17 }
 0x635   : > { %2313 = vmatpush1.bf16.msra.mxu0 %v2312_v38 }
 0x636   : > { %v1875_v55 = vpop.f32.mrb[38].mxu1 }
 0x637   : > { %v1886_v42 = vadd.f32 %v1875_v55, %v2833_v40  ;;  %v1877_v33 = vpop.f32.mrb[39].mxu1 }
 0x638   : > { %v1887_v19 = vadd.f32 %v1877_v33, %v2835_v41 }
 0x639   : > { %v2316_v34 = vpack.c.bf16 %v1886_v42, %v1884_v39 }
 0x63a   : > { %v2314_v23 = vpack.c.bf16 %v1887_v19, %v1885_v31 }
 0x63c   : > { %2315 = vmatprep.subr.bf16.mxu0 %v2314_v23 }
 0x63d   : > { %2317 = vmatpush1.bf16.msra.mxu0 %v2316_v34 }
 0x640   : > { %2145 = vmatmul.mubr.msk.f32.vlgmr.msra.gmra.mrb[24].mxu0 %vm799_vm0, %v420_v32 }
 0x713   : > { %v1962_v1 = vpop.f32.mrb[24].mxu0 }
 0x714   : > { %v1963_v43 = vadd.f32 %v1962_v1, %v1891_v29  ;;  %v1964_v61 = vpop.f32.mrb[25].mxu0 }
 0x715   : > { %v1965_v40 = vadd.f32 %v1964_v61, %v1891_v29 }
 0x717   : > { %v1969_v41 = vcombine.low %v1963_v43, %v1965_v40 }
 0x719   : > { %1971 = vst [vmem:[%s362_s11] sm:$0xff] %v1969_v41 }
 0x71a PF: > { %s18_s27 = sadd.s32 1, %s2451_s27  }
 0x71b   : > { %p15_p4 = scmp.ge.s32.totalorder %s18_s27, 4  }
 0x71d   :  { %17 = sbr.rel (!%p15_p4) target bundleno = 1 (0x1), region = 91 }

</bundles_post_ra>
